<compile_context>
chip_gen: v5e
topology: v5e:2x2
jax: 0.10.0
libtpu: 0.0.40
codegen_flags: <defaults>
</compile_context>

<pallas_src>
import numpy as np
import jax
import jax.numpy as jnp
from jax.experimental import pallas as pl
from jax.experimental.pallas import tpu as pltpu

_EPS = 1e-5  # PyTorch InstanceNorm3d default


# ---------------------------------------------------------------------------
# Pallas kernels (all operate on per-sample (C, S) blocks, S lane-dense)
# ---------------------------------------------------------------------------

def _inorm_silu_kernel(x_ref, g_ref, b_ref, o_ref):
    # x: (C, S) f32. InstanceNorm3d (biased var, eps=1e-5) + affine + SiLU -> bf16.
    x = x_ref[...]
    mean = jnp.mean(x, axis=1, keepdims=True)
    var = jnp.mean((x - mean) ** 2, axis=1, keepdims=True)
    y = (x - mean) * jax.lax.rsqrt(var + _EPS)
    y = y * g_ref[...] + b_ref[...]
    o_ref[...] = (y * jax.nn.sigmoid(y)).astype(o_ref.dtype)


def _conv_in_silu_kernel(w_ref, p_ref, b_ref, g_ref, be_ref, o_ref):
    # conv (as matmul) + bias, then fused InstanceNorm + affine + SiLU.
    # w: (Cout, K) bf16, p: (K, S) bf16 -> acc (Cout, S) f32.
    acc = jnp.dot(w_ref[...], p_ref[...], preferred_element_type=jnp.float32)
    acc = acc + b_ref[...]
    mean = jnp.mean(acc, axis=1, keepdims=True)
    var = jnp.mean((acc - mean) ** 2, axis=1, keepdims=True)
    y = (acc - mean) * jax.lax.rsqrt(var + _EPS)
    y = y * g_ref[...] + be_ref[...]
    o_ref[...] = (y * jax.nn.sigmoid(y)).astype(o_ref.dtype)


def _conv_add_kernel(w_ref, p_ref, b_ref, res_ref, o_ref):
    # conv (as matmul) + bias + identity-skip residual add (fused epilogue).
    acc = jnp.dot(w_ref[...], p_ref[...], preferred_element_type=jnp.float32)
    o_ref[...] = (acc + b_ref[...] + res_ref[...]).astype(o_ref.dtype)


def _conv_skipconv_add_kernel(w_ref, p_ref, b_ref, ws_ref, x_ref, bs_ref, o_ref):
    # conv (as matmul) + bias + (1x1x1 skip conv of raw x) + residual add (fused).
    acc = jnp.dot(w_ref[...], p_ref[...], preferred_element_type=jnp.float32)
    skip = jnp.dot(ws_ref[...], x_ref[...], preferred_element_type=jnp.float32)
    o_ref[...] = (acc + b_ref[...] + skip + bs_ref[...]).astype(o_ref.dtype)


def _conv_bias_kernel(w_ref, p_ref, b_ref, o_ref):
    # plain conv (as matmul) + bias (used for the Downsample strided conv).
    acc = jnp.dot(w_ref[...], p_ref[...], preferred_element_type=jnp.float32)
    o_ref[...] = (acc + b_ref[...]).astype(o_ref.dtype)


# ---------------------------------------------------------------------------
# pallas_call wrappers
# ---------------------------------------------------------------------------

def _col(v):
    return v.reshape(v.shape[0], 1).astype(jnp.float32)


def _params(parallel=True):
    return pltpu.CompilerParams(dimension_semantics=("parallel",))


def inorm_silu(x, gamma, beta):
    """x: (N, C, S) f32 -> (N, C, S) bf16 (normalized + SiLU)."""
    N, C, S = x.shape
    return pl.pallas_call(
        _inorm_silu_kernel,
        out_shape=jax.ShapeDtypeStruct((N, C, S), jnp.bfloat16),
        grid=(N,),
        in_specs=[
            pl.BlockSpec((None, C, S), lambda n: (n, 0, 0)),
            pl.BlockSpec((C, 1), lambda n: (0, 0)),
            pl.BlockSpec((C, 1), lambda n: (0, 0)),
        ],
        out_specs=pl.BlockSpec((None, C, S), lambda n: (n, 0, 0)),
        compiler_params=_params(),
    )(x, _col(gamma), _col(beta))


def conv_in_norm_silu(patches, w_mat, bias, gamma, beta):
    """patches: (N, K, S) bf16, w_mat: (Cout, K) bf16 -> (N, Cout, S) bf16."""
    N, K, S = patches.shape
    Cout = w_mat.shape[0]
    return pl.pallas_call(
        _conv_in_silu_kernel,
        out_shape=jax.ShapeDtypeStruct((N, Cout, S), jnp.bfloat16),
        grid=(N,),
        in_specs=[
            pl.BlockSpec((Cout, K), lambda n: (0, 0)),
            pl.BlockSpec((None, K, S), lambda n: (n, 0, 0)),
            pl.BlockSpec((Cout, 1), lambda n: (0, 0)),
            pl.BlockSpec((Cout, 1), lambda n: (0, 0)),
            pl.BlockSpec((Cout, 1), lambda n: (0, 0)),
        ],
        out_specs=pl.BlockSpec((None, Cout, S), lambda n: (n, 0, 0)),
        compiler_params=_params(),
    )(w_mat, patches, _col(bias), _col(gamma), _col(beta))


def conv_add_residual(patches, w_mat, bias, res):
    """conv + bias + identity residual. res: (N, Cout, S) f32 -> (N, Cout, S) f32."""
    N, K, S = patches.shape
    Cout = w_mat.shape[0]
    return pl.pallas_call(
        _conv_add_kernel,
        out_shape=jax.ShapeDtypeStruct((N, Cout, S), jnp.float32),
        grid=(N,),
        in_specs=[
            pl.BlockSpec((Cout, K), lambda n: (0, 0)),
            pl.BlockSpec((None, K, S), lambda n: (n, 0, 0)),
            pl.BlockSpec((Cout, 1), lambda n: (0, 0)),
            pl.BlockSpec((None, Cout, S), lambda n: (n, 0, 0)),
        ],
        out_specs=pl.BlockSpec((None, Cout, S), lambda n: (n, 0, 0)),
        compiler_params=_params(),
    )(w_mat, patches, _col(bias), res)


def conv_skipconv_residual(patches, w_mat, bias, x_bf, ws_mat, bs):
    """conv + bias + (1x1x1 skip conv of raw x) residual -> (N, Cout, S) f32."""
    N, K, S = patches.shape
    Cout = w_mat.shape[0]
    Cin = ws_mat.shape[1]
    return pl.pallas_call(
        _conv_skipconv_add_kernel,
        out_shape=jax.ShapeDtypeStruct((N, Cout, S), jnp.float32),
        grid=(N,),
        in_specs=[
            pl.BlockSpec((Cout, K), lambda n: (0, 0)),
            pl.BlockSpec((None, K, S), lambda n: (n, 0, 0)),
            pl.BlockSpec((Cout, 1), lambda n: (0, 0)),
            pl.BlockSpec((Cout, Cin), lambda n: (0, 0)),
            pl.BlockSpec((None, Cin, S), lambda n: (n, 0, 0)),
            pl.BlockSpec((Cout, 1), lambda n: (0, 0)),
        ],
        out_specs=pl.BlockSpec((None, Cout, S), lambda n: (n, 0, 0)),
        compiler_params=_params(),
    )(w_mat, patches, _col(bias), ws_mat, x_bf, _col(bs))


def conv_bias(patches, w_mat, bias):
    """plain conv + bias -> (N, Cout, S) f32 (Downsample strided conv)."""
    N, K, S = patches.shape
    Cout = w_mat.shape[0]
    return pl.pallas_call(
        _conv_bias_kernel,
        out_shape=jax.ShapeDtypeStruct((N, Cout, S), jnp.float32),
        grid=(N,),
        in_specs=[
            pl.BlockSpec((Cout, K), lambda n: (0, 0)),
            pl.BlockSpec((None, K, S), lambda n: (n, 0, 0)),
            pl.BlockSpec((Cout, 1), lambda n: (0, 0)),
        ],
        out_specs=pl.BlockSpec((None, Cout, S), lambda n: (n, 0, 0)),
        compiler_params=_params(),
    )(w_mat, patches, _col(bias))


# ---------------------------------------------------------------------------
# im2col glue (transposed layout: rows = (tap, cin), cols = spatial) — XLA side.
# ---------------------------------------------------------------------------

def im2col_T(h, D, H, W, k=3, stride=1, pad=1):
    """h: (N, C, S=D*H*W) -> patches (N, k^3*C, S_out) bf16, plus (Do, Ho, Wo)."""
    N, C, _ = h.shape
    x = h.reshape(N, C, D, H, W).astype(jnp.bfloat16)
    xp = jnp.pad(x, ((0, 0), (0, 0), (pad, pad), (pad, pad), (pad, pad)))
    Do = (D + 2 * pad - k) // stride + 1
    Ho = (H + 2 * pad - k) // stride + 1
    Wo = (W + 2 * pad - k) // stride + 1
    cols = []
    for dz in range(k):
        for dy in range(k):
            for dx in range(k):
                cols.append(xp[:, :,
                               dz:dz + Do * stride:stride,
                               dy:dy + Ho * stride:stride,
                               dx:dx + Wo * stride:stride])
    p = jnp.stack(cols, axis=1)                       # (N, k^3, C, Do, Ho, Wo)
    return p.reshape(N, k * k * k * C, Do * Ho * Wo), (Do, Ho, Wo)


# ---------------------------------------------------------------------------
# Parameter construction (deterministic, in-script).  Weights are stored as the
# (Cout, K) matmul matrices in bf16 (K ordered (dz, dy, dx, cin) to match im2col_T).
# ---------------------------------------------------------------------------

def conv_params(key, cin, cout, k):
    k1, k2 = jax.random.split(key)
    fan_in = cin * (k ** 3)
    w = jax.random.normal(k1, (cout, cin, k, k, k), jnp.float32) / np.sqrt(fan_in)
    b = jax.random.normal(k2, (cout,), jnp.float32) * 0.01
    w_mat = jnp.transpose(w, (0, 2, 3, 4, 1)).reshape(cout, cin * k ** 3)
    return w_mat.astype(jnp.bfloat16), b


def res_block_params(key, cin, cout):
    keys = jax.random.split(key, 3)
    p = {
        "in_gamma": jnp.ones((cin,), jnp.float32),    # InstanceNorm3d affine init
        "in_beta": jnp.zeros((cin,), jnp.float32),
        "out_gamma": jnp.ones((cout,), jnp.float32),
        "out_beta": jnp.zeros((cout,), jnp.float32),
    }
    p["in_w_mat"], p["in_b"] = conv_params(keys[0], cin, cout, 3)
    p["out_w_mat"], p["out_b"] = conv_params(keys[1], cout, cout, 3)
    if cin != cout:
        # use_skip_conv=False and cin != cout -> 1x1x1 skip conv
        p["skip_w_mat"], p["skip_b"] = conv_params(keys[2], cin, cout, 1)
    return p


def build_encoder_params(key, input_channels=4, features_per_stage=(8, 16)):
    keys = jax.random.split(key, 4)
    params = {}
    params["s0_block0"] = res_block_params(keys[0], input_channels, features_per_stage[0])
    params["s1_block0"] = res_block_params(keys[1], features_per_stage[0], features_per_stage[1])
    w, b = conv_params(keys[2], features_per_stage[1], features_per_stage[1], 3)
    params["s1_down"] = {"w_mat": w, "b": b}
    params["mid_block0"] = res_block_params(keys[3], features_per_stage[1], features_per_stage[1])
    return params


# ---------------------------------------------------------------------------
# ResConvBlock / Downsample / ResConvEncoder forward (no time embedding)
# ---------------------------------------------------------------------------

def res_conv_block(x, p, D, H, W):
    """x: (N, Cin, S) f32 -> (N, Cout, S) f32."""
    # in_layers: InstanceNorm3d -> SiLU  (one fused kernel, bf16 out)
    h = inorm_silu(x, p["in_gamma"], p["in_beta"])
    # conv1 + bias + out_layers' InstanceNorm3d + SiLU (one fused kernel)
    p1, _ = im2col_T(h, D, H, W, k=3, stride=1, pad=1)
    h = conv_in_norm_silu(p1, p["in_w_mat"], p["in_b"], p["out_gamma"], p["out_beta"])
    # conv2 + bias + skip connection + residual add (one fused kernel)
    p2, _ = im2col_T(h, D, H, W, k=3, stride=1, pad=1)
    if "skip_w_mat" in p:
        out = conv_skipconv_residual(p2, p["out_w_mat"], p["out_b"],
                                     x.astype(jnp.bfloat16), p["skip_w_mat"], p["skip_b"])
    else:
        out = conv_add_residual(p2, p["out_w_mat"], p["out_b"], x)
    return out


def downsample(x, p, D, H, W, stride=2):
    """Downsample(use_conv=True): Conv3d(k=3, stride=stride, padding=1)."""
    p1, (Do, Ho, Wo) = im2col_T(x, D, H, W, k=3, stride=stride, pad=1)
    out = conv_bias(p1, p["w_mat"], p["b"])
    return out, (Do, Ho, Wo)


def res_conv_encoder_forward(x_ncdhw, params):
    """x_ncdhw: (N, C, D, H, W) like PyTorch. Returns (N, C_out, D', H', W')."""
    N, C, D, H, W = x_ncdhw.shape
    x = x_ncdhw.reshape(N, C, D * H * W).astype(jnp.float32)   # channels-first, flat spatial

    # stage 0: ResConvBlock(4 -> 8); stride 1 -> no downsample; zero_conv = Identity
    x = res_conv_block(x, params["s0_block0"], D, H, W)
    # stage 1: ResConvBlock(8 -> 16); stride 2 -> Downsample conv(16 -> 16, stride 2)
    x = res_conv_block(x, params["s1_block0"], D, H, W)
    x, (D, H, W) = downsample(x, params["s1_down"], D, H, W, stride=2)
    # middle stage (contain_middle=True): ResConvBlock(16 -> 16); zero_conv = Identity
    x = res_conv_block(x, params["mid_block0"], D, H, W)

    # return_skips=False -> return last output, back to NCDHW
    Cout = x.shape[1]
    return x.reshape(N, Cout, D, H, W)


# ---------------------------------------------------------------------------
# Main
# ---------------------------------------------------------------------------

if __name__ == "__main__":
    key = jax.random.PRNGKey(0)
    k_in, k_par = jax.random.split(key)

    N, C, D, H, W = 2, 4, 8, 8, 8
    x = jax.random.normal(k_in, (N, C, D, H, W), jnp.float32)

    params = build_encoder_params(k_par, input_channels=C, features_per_stage=(8, 16))

    out = res_conv_encoder_forward(x, params)
    out = jax.block_until_ready(out)

    expected_shape = (N, 16, D // 2, H // 2, W // 2)
    assert out.shape == expected_shape, (out.shape, expected_shape)
    assert bool(jnp.all(jnp.isfinite(out)))
    print("KERNEL_OK")
</pallas_src>

<mosaic_0001>
module attributes {stable_mosaic.version = 11 : i64} {
  func.func @_inorm_silu_kernel(%arg0: i32, %arg1: memref<1x4x512xf32, #tpu.memory_space<vmem>>, %arg2: memref<4x1xf32, #tpu.memory_space<vmem>>, %arg3: memref<4x1xf32, #tpu.memory_space<vmem>>, %arg4: memref<1x4x512xbf16, #tpu.memory_space<vmem>>) attributes {dimension_semantics = [#tpu.dimension_semantics<parallel>], iteration_bounds = array<i64: 2>, scalar_prefetch = 0 : i64, scratch_operands = 0 : i64, tpu.core_type = #tpu.core_type<tc>, window_params = [{transform_indices = @transform_0, window_bounds = array<i64: 1, 4, 512>}, {pipeline_mode = #tpu.pipeline_mode<synchronous>, transform_indices = @transform_1, window_bounds = array<i64: 4, 1>}, {pipeline_mode = #tpu.pipeline_mode<synchronous>, transform_indices = @transform_2, window_bounds = array<i64: 4, 1>}, {transform_indices = @transform_3, window_bounds = array<i64: 1, 4, 512>}]} {
    %c0 = arith.constant 0 : index
    %c0_0 = arith.constant 0 : index
    %c0_1 = arith.constant 0 : index
    %0 = vector.load %arg1[%c0, %c0_0, %c0_1] : memref<1x4x512xf32, #tpu.memory_space<vmem>>, vector<1x4x512xf32>
    %1 = vector.shape_cast %0 : vector<1x4x512xf32> to vector<4x512xf32>
    %cst = arith.constant dense<0.000000e+00> : vector<4xf32>
    %2 = vector.multi_reduction <add>, %1, %cst [1] : vector<4x512xf32> to vector<4xf32>
    %3 = vector.shape_cast %2 : vector<4xf32> to vector<4x1xf32>
    %cst_2 = arith.constant 5.120000e+02 : f32
    %4 = vector.broadcast %cst_2 : f32 to vector<4x1xf32>
    %5 = arith.divf %3, %4 : vector<4x1xf32>
    %6 = vector.broadcast %5 : vector<4x1xf32> to vector<4x512xf32>
    %7 = arith.subf %1, %6 : vector<4x512xf32>
    %8 = arith.mulf %7, %7 : vector<4x512xf32>
    %cst_3 = arith.constant dense<0.000000e+00> : vector<4xf32>
    %9 = vector.multi_reduction <add>, %8, %cst_3 [1] : vector<4x512xf32> to vector<4xf32>
    %10 = vector.shape_cast %9 : vector<4xf32> to vector<4x1xf32>
    %cst_4 = arith.constant 5.120000e+02 : f32
    %11 = vector.broadcast %cst_4 : f32 to vector<4x1xf32>
    %12 = arith.divf %10, %11 : vector<4x1xf32>
    %13 = vector.broadcast %5 : vector<4x1xf32> to vector<4x512xf32>
    %14 = arith.subf %1, %13 : vector<4x512xf32>
    %cst_5 = arith.constant 9.99999974E-6 : f32
    %15 = vector.broadcast %cst_5 : f32 to vector<4x1xf32>
    %16 = arith.addf %12, %15 : vector<4x1xf32>
    %17 = math.rsqrt %16 : vector<4x1xf32>
    %18 = vector.broadcast %17 : vector<4x1xf32> to vector<4x512xf32>
    %19 = arith.mulf %14, %18 : vector<4x512xf32>
    %c0_6 = arith.constant 0 : index
    %c0_7 = arith.constant 0 : index
    %20 = vector.load %arg2[%c0_6, %c0_7] : memref<4x1xf32, #tpu.memory_space<vmem>>, vector<4x1xf32>
    %21 = vector.broadcast %20 : vector<4x1xf32> to vector<4x512xf32>
    %22 = arith.mulf %19, %21 : vector<4x512xf32>
    %c0_8 = arith.constant 0 : index
    %c0_9 = arith.constant 0 : index
    %23 = vector.load %arg3[%c0_8, %c0_9] : memref<4x1xf32, #tpu.memory_space<vmem>>, vector<4x1xf32>
    %24 = vector.broadcast %23 : vector<4x1xf32> to vector<4x512xf32>
    %25 = arith.addf %22, %24 : vector<4x512xf32>
    %26 = arith.negf %25 : vector<4x512xf32>
    %27 = math.exp %26 : vector<4x512xf32>
    %cst_10 = arith.constant 1.000000e+00 : f32
    %28 = vector.broadcast %cst_10 : f32 to vector<4x512xf32>
    %29 = arith.addf %28, %27 : vector<4x512xf32>
    %30 = arith.divf %28, %29 : vector<4x512xf32>
    %31 = arith.mulf %25, %30 : vector<4x512xf32>
    %32 = arith.truncf %31 : vector<4x512xf32> to vector<4x512xbf16>
    %c0_11 = arith.constant 0 : index
    %c0_12 = arith.constant 0 : index
    %c0_13 = arith.constant 0 : index
    %33 = vector.load %arg4[%c0_11, %c0_12, %c0_13] : memref<1x4x512xbf16, #tpu.memory_space<vmem>>, vector<1x4x512xbf16>
    %34 = vector.shape_cast %33 : vector<1x4x512xbf16> to vector<4x512xbf16>
    %35 = vector.shape_cast %32 : vector<4x512xbf16> to vector<1x4x512xbf16>
    tpu.vector_store %arg4[%c0_11, %c0_12, %c0_13], %35 {strides = array<i32>} : memref<1x4x512xbf16, #tpu.memory_space<vmem>>, vector<1x4x512xbf16>,
    return
  }
  func.func @transform_0(%arg0: i32) -> (i32, i32, i32) {
    %c0_i32 = arith.constant 0 : i32
    %c0_i32_0 = arith.constant 0 : i32
    %c0_i32_1 = arith.constant 0 : i32
    return %arg0, %c0_i32, %c0_i32_0 : i32, i32, i32
  }
  func.func @transform_1(%arg0: i32) -> (i32, i32) {
    %c0_i32 = arith.constant 0 : i32
    %c0_i32_0 = arith.constant 0 : i32
    %c0_i32_1 = arith.constant 0 : i32
    return %c0_i32, %c0_i32_0 : i32, i32
  }
  func.func @transform_2(%arg0: i32) -> (i32, i32) {
    %c0_i32 = arith.constant 0 : i32
    %c0_i32_0 = arith.constant 0 : i32
    %c0_i32_1 = arith.constant 0 : i32
    return %c0_i32, %c0_i32_0 : i32, i32
  }
  func.func @transform_3(%arg0: i32) -> (i32, i32, i32) {
    %c0_i32 = arith.constant 0 : i32
    %c0_i32_0 = arith.constant 0 : i32
    %c0_i32_1 = arith.constant 0 : i32
    return %arg0, %c0_i32, %c0_i32_0 : i32, i32, i32
  }
}

</mosaic_0001>

<bundles_post_ra>
// kernel: tpu_custom_call.1
= control target key start
LH: loop header
LB: loop body
LE: loop exit
PB: predicated region body
PF: predicated region fallthrough
CT: control target
= control target key end

     0   :  { %8 = vsyncpa [#allocation3], 0  ;;  %s801_s0 = inlined_call_operand.hbm [shape: f32[2,4,512], index: 0, kind: input, shape index: {}]   ;;  %s802_s1 = inlined_call_operand.vmem [shape: f32[4,1], index: 1, kind: input, shape index: {}]   ;;  %s803_s2 = inlined_call_operand.vmem [shape: f32[4,1], index: 2, kind: input, shape index: {}]   ;;  %s804_s3 = inlined_call_operand.hbm [shape: bf16[2,4,512], index: 3, kind: output, shape index: {}]  }
   0x1   :  { %10 = vsyncpa [#allocation3 + $0x1], 0 }
   0x2   :  { %11 = vsyncpa [#allocation4], 0 }
   0x3   :  { %13 = vsyncpa [#allocation4 + $0x1], 0  ;;  %s658_s12 = smov 0   ;;  %s660_s13 = smov 0  }
   0x4   :  { %s662_s14 = smov 0   ;;  %s664_s15 = smov 0  }
   0x5 LB: > { %s679_s16 = sadd.s32 4294967295, %s633_s15   ;;  %s456_s17 = sadd.s32 4294967294, %s633_s15   ;;  %s633_s15 = sphi %s664_s15, %s814_s15   ;;  %s629_s14 = sphi %s662_s14, %s813_s14   ;;  %s625_s13 = sphi %s660_s13, %s812_s13   ;;  %s621_s12 = sphi %s658_s12, %s811_s12  }
   0x6   : > { %s683_s18 = sadd.s32 1, %s633_s15   ;;  %s26_s19 = sadd.s32 1, %s629_s14 }
   0x7   : > { %s23_s20 = ssub.s32 %s633_s15, %s683_s18  ;;  %p33_p0 = scmp.ne.s32.totalorder %s629_s14, %s625_s13 }
   0x8   : > { %p24_p1 = scmp.eq.s32.totalorder %s23_s20, 0  ;;  %p34_p2 = scmp.eq.s32.totalorder %s633_s15, 0 }
   0x9   : > { %p39_p3 = scmp.ne.s32.totalorder %s625_s13, %s621_s12  ;;  %p40_p4 = scmp.eq.s32.totalorder %s679_s16, 0 }
   0xa   : > { %s695_s21 = scalar_select %p24_p1, %s629_s14, %s26_s19  }
   0xb   : > { %p697_p5 = por %p34_p2, %p33_p0  ;;  %p701_p6 = por %p40_p4, %p39_p3 }
   0xc   : > { %p105_p7 = scmp.eq.s32.totalorder %s679_s16, 1  ;;  %p111_p8 = scmp.eq.s32.totalorder %s456_s17, 1 }
   0xd   : > { %p486_p10 = scmp.lt.s32.totalorder %s633_s15, 2  ;;  %s137_s26 = sand.u32 1, %s629_s14  }
   0xe   : > { %p708_p11 = por %p105_p7, %p33_p0  ;;  %p712_p12 = por %p111_p8, %p39_p3 }
   0xf   : > { %s472_s27 = sshll.u32 %s633_s15, 4  ;;  %s459_s28 = sshll.u32 %s137_s26, 4 }
  0x10   : > { %s146_s4 = scalar_lea.hbm %s801_s0, %s472_s27  ;;  %s141_s6 = scalar_lea.vmem [#allocation2], %s459_s28 }
  0x11   : > { %s148_s5 = sshll.u32 %s146_s4, 4  ;;  %s150_s7 = sshll.u32 %s141_s6, 4  ;;  %s149_s5 = int_to_ptr.hbm [resolvable:$true] %s148_s5  ;;  %s151_s7 = int_to_ptr.vmem [resolvable:$true] %s150_s7 }
  0x12   : > { %p723_p13 = pnand %p486_p10, %p697_p5  ;;  %p462_p0 = scmp.ge.s32.totalorder %s633_s15, 1 }
  0x13   : > { %p155_p1 = scmp.lt.s32.totalorder %s633_s15, 3  ;;  %s138_s9 = scalar_lea.sflag [#allocation3], %s137_s26 }
  0x14   : > { %s537_s10 = sshra.s32 %s149_s5, 4  ;;  %p541_p3 = pneg %p723_p13  ;;  %s538_s10 = int_to_ptr.hbm [resolvable:$true] %s537_s10 }
  0x15   : > { %s539_s11 = scalar_lea.hbm %s538_s10, 16  ;;  %s544_s20 = scalar_lea.hbm %s801_s0, 32 }
  0x16   : > { %p540_p2 = scmp.ne.s32.totalorder %s538_s10, %s539_s11  ;;  %p545_p5 = scmp.lt.s32.totalorder %s538_s10, %s801_s0 }
  0x17   : > { %p546_p8 = scmp.lt.s32.totalorder %s544_s20, %s539_s11 }
  0x18   : > { %p542_p4 = pnand %p541_p3, %p540_p2 }
  0x19   : > { %p547_p10 = por %p546_p8, %p545_p5 }
  0x1a   : > { %p543_p7 = pneg %p542_p4 }
  0x1c   : > { %p548_p9 = pnand %p547_p10, %p543_p7 }
  0x1e   : > { %551 = shalt.err (!%p548_p9)
}
  0x1f   : > { %481 = dma.hbm_to_vmem [thread:$0]  (!%p723_p13), %s149_s5, 256, %s151_s7, %s138_s9  }
  0x20   : > { %p156_p2 = pnand %p462_p0, %p155_p1 }
  0x21   : > { %s744_s26 = sand.u32 (!%p156_p2), 1, %s625_s13  }
  0x22   : > { %159 = sbr.rel (%p156_p2) target bundleno = 390 (0x186), region = 32  ;;  %s463_s28 = sshll.u32 (!%p156_p2), %s744_s26, 4 }
  0x23   : > { %s162_s29 = scalar_lea.sflag (!%p156_p2), [#allocation3], %s744_s26  ;;  %s165_s30 = scalar_lea.vmem (!%p156_p2), [#allocation2], %s463_s28 }
  0x27   : > { %612 = dma.done.wait (%p701_p6), %s162_s29, 256  }
  0x28   : > { %614 = vsyncadd (%p701_p6), %s162_s29, 4294967040  ;;  %v189_v0 = vld [vmem:[%s165_s30] sm:$0xff]  ;;  %v190_v1 = vld [vmem:[%s165_s30 + $0x8] sm:$0xff]  ;;  %vm204_vm0 = vcmask 1043456   ;;  %v635_v13 = vmov 512.0   ;;  %v636_v20 = vmov 0  }
  0x29   : > { %193 = vst [vmem:[#allocation1] ss:$2 sm:$0xff] %v189_v0  ;;  %525 = vrcp.f32 %v635_v13  ;;  %v274_v18 = vld [vmem:[%s802_s1] sm:$0xf]  ;;  %523 = vset.pattern.permute.xlu1 %v636_v20  ;;  %524 = vset.pattern.permute.xlu0 %v636_v20  ;;  %v637_v21 = vmov 839922192  }
  0x2a   : > { %195 = vst [vmem:[#allocation1 + $0x10] ss:$2 sm:$0xff] %v190_v1  ;;  %v224_v22 = vunpack.c.l.s4 %v637_v21  ;;  %277 = vperm.xlu1 %523, %v274_v18   ;;  %v286_v26 = vld [vmem:[%s803_s2] sm:$0xf]  ;;  %s464_s7 = sshll.u32 %s744_s26, 3  ;;  %s473_s8 = sshll.u32 %s679_s16, 3 }
  0x2b   : > { %s381_s11 = scalar_lea.hbm %s804_s3, %s473_s8  ;;  %vm358_vm13 = vcmask 1041408   ;;  %vm362_vm14 = vcmask 1045508   ;;  %s188_s17 = scalar_lea.vmem [#allocation5], %s464_s7 }
  0x2c   : > { %v225_v24 = vunpack.c.0.s8 %v224_v22  ;;  %s383_s19 = sshll.u32 %s188_s17, 4  ;;  %s385_s20 = sshll.u32 %s381_s11, 4  ;;  %s384_s19 = int_to_ptr.vmem [resolvable:$true] %s383_s19  ;;  %s386_s20 = int_to_ptr.hbm [resolvable:$true] %s385_s20 }
  0x2d   : > { %s370_s16 = scalar_lea.sflag [#allocation4], %s744_s26  ;;  %s581_s22 = sshra.s32 %s386_s20, 4  ;;  %s582_s22 = int_to_ptr.hbm [resolvable:$true] %s581_s22 }
  0x2e   : > { %s583_s27 = scalar_lea.hbm %s582_s22, 8  ;;  %s587_s30 = scalar_lea.hbm %s804_s3, 16 }
  0x2f   : > { %v526_v14 = vpop.eup %525  ;;  %p584_p6 = scmp.ne.s32.totalorder %s582_s22, %s583_s27  ;;  %p588_p0 = scmp.lt.s32.totalorder %s582_s22, %s804_s3 }
  0x30   : > { %v196_v2 = vld.sshfl [vmem:[#allocation1] sm:$0xff pattern:$0x75316420]  ;;  %v197_v3 = vld.sshfl [vmem:[#allocation1 + $0x8] sm:$0xff pattern:$0x75316420]  ;;  %vm219_vm1 = vweird.f32 %v526_v14  ;;  %p589_p1 = scmp.lt.s32.totalorder %s587_s30, %s583_s27 }
  0x31   : > { %v198_v4 = vld.sshfl [vmem:[#allocation1 + $0x10] sm:$0xff pattern:$0x75316420]  ;;  %v199_v5 = vld.sshfl [vmem:[#allocation1 + $0x18] sm:$0xff pattern:$0x75316420]  ;;  %p585_p9 = pnand %p584_p6, %p708_p11 }
  0x32   : > { %v205_v6 = vsel %vm204_vm0, %v196_v2, 0.0  ;;  %v206_v7 = vsel %vm204_vm0, %v197_v3, 0.0  ;;  %v208_v8 = vsel %vm204_vm0, %v198_v4, 0.0  ;;  %v210_v10 = vsel %vm204_vm0, %v199_v5, 0.0  ;;  %289 = vperm.xlu1 %523, %v286_v26   ;;  %p590_p3 = por %p589_p1, %p588_p0 }
  0x33   : > { %v207_v9 = vadd.f32 %v206_v7, %v205_v6  ;;  %v215_v15 = vmul.f32 512.0, %v526_v14  ;;  %p586_p13 = pneg %p585_p9 }
  0x35   : > { %v209_v11 = vadd.f32 %v208_v8, %v207_v9  ;;  %v216_v16 = vsub.f32 1.0, %v215_v15  ;;  %p591_p4 = pnand %p590_p3, %p586_p13 }
  0x37   : > { %v211_v12 = vadd.f32 %v210_v10, %v209_v11  ;;  %v217_v17 = vmul.f32 %v526_v14, %v216_v16 }
  0x39   : > { %212 = vadd.xlane.f32.xlu0 %v211_v12  ;;  %v218_v19 = vadd.f32 %v526_v14, %v217_v17 }
  0x3b   : > { %v220_v23 = vsel %vm219_vm1, %v526_v14, %v218_v19 }
  0x9c   : > { %v278_v50 = vpop.permute.xlu1 %277 }
  0x9d   : > { %v282_v59 = vperm.slane %v278_v50, %v225_v24 }
  0xa4   : > { %v290_v56 = vpop.permute.xlu1 %289 }
  0xa5   : > { %v294_v62 = vperm.slane %v290_v56, %v225_v24 }
  0xac   : > { %v213_v25 = vpop.xlane.xlu0 %212 }
  0xad   : > { %v221_v27 = vmul.f32 %v220_v23, %v213_v25 }
  0xaf   : > { %v226_v28 = vperm.slane %v221_v27, %v225_v24 }
  0xb1   : > { %v228_v29 = vsub.f32 %v189_v0, %v226_v28  ;;  %v229_v30 = vsub.f32 %v190_v1, %v226_v28 }
  0xb3   : > { %v230_v31 = vmul.f32 %v228_v29, %v228_v29  ;;  %v231_v32 = vmul.f32 %v229_v30, %v229_v30 }
  0xb5   : > { %234 = vst [vmem:[#allocation1] ss:$2 sm:$0xff] %v230_v31 }
  0xb6   : > { %236 = vst [vmem:[#allocation1 + $0x10] ss:$2 sm:$0xff] %v231_v32 }
  0xbc   : > { %v237_v33 = vld.sshfl [vmem:[#allocation1] sm:$0xff pattern:$0x75316420]  ;;  %v238_v34 = vld.sshfl [vmem:[#allocation1 + $0x8] sm:$0xff pattern:$0x75316420] }
  0xbd   : > { %v239_v35 = vld.sshfl [vmem:[#allocation1 + $0x10] sm:$0xff pattern:$0x75316420]  ;;  %v245_v36 = vsel %vm204_vm0, %v237_v33, 0.0  ;;  %v246_v37 = vsel %vm204_vm0, %v238_v34, 0.0 }
  0xbe   : > { %v240_v38 = vld.sshfl [vmem:[#allocation1 + $0x18] sm:$0xff pattern:$0x75316420]  ;;  %v247_v39 = vadd.f32 %v246_v37, %v245_v36  ;;  %v248_v40 = vsel %vm204_vm0, %v239_v35, 0.0 }
  0xbf   : > { %v250_v42 = vsel %vm204_vm0, %v240_v38, 0.0 }
  0xc0   : > { %v249_v41 = vadd.f32 %v248_v40, %v247_v39 }
  0xc2   : > { %v251_v43 = vadd.f32 %v250_v42, %v249_v41 }
  0xc4   : > { %252 = vadd.xlane.f32.xlu0 %v251_v43 }
 0x137   : > { %v253_v44 = vpop.xlane.xlu0 %252 }
 0x138   : > { %v254_v45 = vmul.f32 %v253_v44, %v220_v23 }
 0x13a   : > { %v255_v46 = vadd.f32 1e-05, %v254_v45 }
 0x13c   : > { %527 = vrsqrt.f32 %v255_v46  ;;  %vm262_vm3 = vweird.f32 %v255_v46 }
 0x142   : > { %v528_v47 = vpop.eup %527 }
 0x143   : > { %v257_v48 = vmul.f32 %v528_v47, %v255_v46  ;;  %vm263_vm2 = vweird.f32 %v528_v47 }
 0x144   : > { %vm264_vm4 = vmor %vm262_vm3, %vm263_vm2 }
 0x145   : > { %v258_v49 = vmul.f32 %v528_v47, %v257_v48 }
 0x147   : > { %v259_v51 = vmul.f32 0.5, %v258_v49 }
 0x149   : > { %v260_v52 = vsub.f32 1.5, %v259_v51 }
 0x14b   : > { %v261_v53 = vmul.f32 %v528_v47, %v260_v52 }
 0x14d   : > { %v265_v54 = vsel %vm264_vm4, %v528_v47, %v261_v53 }
 0x14e   : > { %v270_v55 = vperm.slane %v265_v54, %v225_v24 }
 0x150   : > { %v272_v57 = vmul.f32 %v270_v55, %v228_v29  ;;  %v273_v58 = vmul.f32 %v270_v55, %v229_v30 }
 0x152   : > { %v284_v60 = vmul.f32 %v282_v59, %v272_v57  ;;  %v285_v61 = vmul.f32 %v282_v59, %v273_v58 }
 0x154   : > { %v296_v63 = vadd.f32 %v294_v62, %v284_v60  ;;  %v297_v0 = vadd.f32 %v294_v62, %v285_v61 }
 0x156   : > { %v465_v1 = vmul.f32 -1.442695, %v296_v63  ;;  %v466_v2 = vmul.f32 -1.442695, %v297_v0 }
 0x158   : > { %529 = vpow2.f32 %v465_v1 }
 0x159   : > { %531 = vpow2.f32 %v466_v2 }
 0x15e   : > { %v530_v3 = vpop.eup %529 }
 0x15f   : > { %v532_v4 = vpop.eup %531  ;;  %v304_v5 = vadd.f32 1.0, %v530_v3 }
 0x160   : > { %v305_v6 = vadd.f32 1.0, %v532_v4 }
 0x161   : > { %533 = vrcp.f32 %v304_v5  ;;  %v317_v12 = vand.u32 2147483648, %v304_v5  ;;  %v315_v15 = vand.u32 2147483647, %v304_v5  ;;  %vm311_vm7 = vweird.f32 %v304_v5 }
 0x162   : > { %535 = vrcp.f32 %v305_v6  ;;  %v332_v16 = vand.u32 2147483648, %v305_v6  ;;  %v330_v18 = vand.u32 2147483647, %v305_v6  ;;  %vm326_vm9 = vweird.f32 %v305_v6 }
 0x163   : > { %v318_v20 = vor.u32 1.1754944e-38, %v317_v12  ;;  %vm316_vm10 = vcmp.eq.f32.partialorder %v315_v15, 8.507059e+37 }
 0x164   : > { %v333_v23 = vor.u32 1.1754944e-38, %v332_v16  ;;  %vm331_vm12 = vcmp.eq.f32.partialorder %v330_v18, 8.507059e+37 }
 0x167   : > { %v534_v7 = vpop.eup %533 }
 0x168   : > { %v536_v8 = vpop.eup %535  ;;  %v307_v9 = vmul.f32 %v534_v7, %v304_v5  ;;  %vm312_vm5 = vweird.f32 %v534_v7 }
 0x169   : > { %v322_v10 = vmul.f32 %v536_v8, %v305_v6  ;;  %vm327_vm6 = vweird.f32 %v536_v8  ;;  %vm313_vm8 = vmor %vm311_vm7, %vm312_vm5 }
 0x16a   : > { %v308_v11 = vsub.f32 1.0, %v307_v9  ;;  %vm328_vm11 = vmor %vm326_vm9, %vm327_vm6 }
 0x16b   : > { %v323_v13 = vsub.f32 1.0, %v322_v10 }
 0x16c   : > { %v309_v14 = vmul.f32 %v534_v7, %v308_v11 }
 0x16d   : > { %v324_v17 = vmul.f32 %v536_v8, %v323_v13 }
 0x16e   : > { %v310_v19 = vadd.f32 %v534_v7, %v309_v14 }
 0x16f   : > { %v325_v21 = vadd.f32 %v536_v8, %v324_v17 }
 0x170   : > { %v314_v22 = vsel %vm313_vm8, %v534_v7, %v310_v19 }
 0x171   : > { %v319_v24 = vsel %vm316_vm10, %v318_v20, %v314_v22  ;;  %v329_v25 = vsel %vm328_vm11, %v536_v8, %v325_v21 }
 0x172   : > { %v334_v26 = vsel %vm331_vm12, %v333_v23, %v329_v25  ;;  %v336_v27 = vmul.f32 %v319_v24, %v296_v63 }
 0x173   : > { %v337_v28 = vmul.f32 %v334_v26, %v297_v0 }
 0x174   : > { %340 = vst [vmem:[#allocation1] ss:$2 sm:$0xff] %v336_v27 }
 0x175   : > { %342 = vst [vmem:[#allocation1 + $0x10] ss:$2 sm:$0xff] %v337_v28 }
 0x17b   : > { %v343_v29 = vld.sshfl [vmem:[#allocation1] sm:$0xff pattern:$0x75316420]  ;;  %v344_v30 = vld.sshfl [vmem:[#allocation1 + $0x8] sm:$0xff pattern:$0x75316420] }
 0x17c   : > { %v345_v31 = vld.sshfl [vmem:[#allocation1 + $0x10] sm:$0xff pattern:$0x75316420]  ;;  %v346_v32 = vld.sshfl [vmem:[#allocation1 + $0x18] sm:$0xff pattern:$0x75316420]  ;;  %v351_v33 = vpack.c.bf16 %v344_v30, %v343_v29 }
 0x17d   : > { %v352_v34 = vpack.c.bf16 %v346_v32, %v345_v31 }
 0x17e   : > { %v355_v35 = vrot.slane %v351_v33, 2 }
 0x17f   : > { %v356_v36 = vrot.slane %v352_v34, 4  ;;  %v357_v37 = vrot.slane %v352_v34, 6 }
 0x180   : > { %v361_v38 = vsel %vm358_vm13, %v351_v33, %v355_v35 }
 0x181   : > { %v365_v39 = vsel %vm362_vm14, %v356_v36, %v357_v37 }
 0x182   : > { %v366_v40 = vsel %vm204_vm0, %v361_v38, %v365_v39 }
 0x183   : > { %368 = vst [vmem:[%s188_s17] sm:$0xff] %v366_v40 }
 0x184   : > { %594 = shalt.err (!%p591_p4)
}
 0x185   : > { %476 = dma.vmem_to_hbm [thread:$0]  (%p708_p11), %s384_s19, 128, %s386_s20, %s370_s16  }
 0x186 PF: > { %s397_s26 = sand.u32 1, %s621_s12   ;;  %p810_p7 = scmp.ge.s32.totalorder %s633_s15, 2 }
 0x187   : > { %s398_s5 = scalar_lea.sflag [#allocation4], %s397_s26 }
 0x188   : > { %p483_p5 = pnand %p810_p7, %p712_p12 }
 0x18a   : > { %p484_p8 = pneg %p483_p5 }
 0x18c   : > { %616 = dma.done.wait (%p484_p8), %s398_s5, 128  }
 0x18d   : > { %618 = vsyncadd (%p484_p8), %s398_s5, 4294967168  ;;  %p16_p10 = scmp.ge.s32.totalorder %s683_s18, 4   ;;  %s811_s12 = smov %s625_s13 }
 0x18e   : > { %s812_s13 = smov %s629_s14  ;;  %s813_s14 = smov %s695_s21 }
 0x18f   : > { %s814_s15 = smov %s683_s18  ;;  %18 = sbr.rel (!%p16_p10) target bundleno = 5 (0x5), region = 80 }
 0x194   :  { %404 = vsyncpa [#allocation3], 1 }
 0x195   :  { %406 = vsyncpa [#allocation3 + $0x1], 1 }
 0x196   :  { %407 = vsyncpa [#allocation4], 1 }
 0x197   :  { %409 = vsyncpa [#allocation4 + $0x1], 1 }

</bundles_post_ra>
